<compile_context>
chip_gen: v7x
topology: tpu7x:2x2x1
jax: 0.10.0
libtpu: 0.0.40
codegen_flags: <defaults>
</compile_context>

<pallas_src>
import functools

import jax
import jax.numpy as jnp
from jax.experimental import pallas as pl
from jax.experimental.pallas import tpu as pltpu


def _round_up(x, m):
    return pl.cdiv(x, m) * m


@functools.lru_cache(maxsize=None)
def _vmem_capacity_bytes():
    """Physical per-core VMEM (128 MiB on v5e/v6e, 64 MiB on v7x)."""
    try:
        cap = getattr(pltpu.get_tpu_info(), "vmem_capacity_bytes", None)
        if cap:
            return int(cap)
    except Exception:
        # Hardware-info query only; never masks kernel errors.  Fall back to the
        # most restrictive generation (v7x).
        pass
    return 64 * 1024 * 1024


@functools.lru_cache(maxsize=None)
def _buffered_mode_supported():
    """Feature-detect BlockSpec(pipeline_mode=pl.Buffered(1)): construction AND
    lowering of a trivial probe kernel (narrow check, not a broad try/except
    around the real kernel)."""
    if not hasattr(pl, "Buffered"):
        return False
    try:
        probe_spec = pl.BlockSpec((8, 128), lambda i: (0, 0),
                                  pipeline_mode=pl.Buffered(1))
    except TypeError:
        return False
    try:
        def _probe(x_ref, o_ref):
            o_ref[...] = x_ref[...]
        out = pl.pallas_call(
            _probe,
            out_shape=jax.ShapeDtypeStruct((16, 128), jnp.float32),
            grid_spec=pltpu.PrefetchScalarGridSpec(
                num_scalar_prefetch=0,
                grid=(2,),
                in_specs=[probe_spec],
                out_specs=pl.BlockSpec((8, 128), lambda i: (i, 0)),
            ),
        )(jnp.zeros((8, 128), jnp.float32))
        jax.block_until_ready(out)
        return True
    except Exception:
        return False


def _linear_kernel(x_ref, w_ref, b_ref, o_ref):
    # x_ref: (TB, H)   w_ref: (H, TS)   b_ref: (1, TS) f32   o_ref: (TB, TS)
    x = x_ref[...].astype(w_ref.dtype)            # in-kernel cast (no-op for f32)
    acc = jnp.dot(x, w_ref[...], preferred_element_type=jnp.float32)
    o_ref[...] = (acc + b_ref[...]).astype(o_ref.dtype)


def prepare_linear_params(weight, bias, *, matmul_dtype=None, tile_s=512):
    """One-time (per-model) preprocessing of the nn.Linear parameters.

    weight: [num_symbols, hidden_dim] (PyTorch layout); bias: [num_symbols].
    Transposes to [H, S], optionally casts to a matmul dtype (bf16 halves weight
    HBM traffic on v6e/v7x), pads S to a lane-dense tile multiple and picks the
    S tile.  Runs once at init, never per forward call.
    """
    S, H = weight.shape
    w = jnp.asarray(weight).T                      # [H, S]
    if matmul_dtype is not None:
        w = w.astype(matmul_dtype)
    b = jnp.asarray(bias, jnp.float32).reshape(1, S)

    vmem_cap = _vmem_capacity_bytes()
    # Keep the whole weight resident (single S tile, single-buffered) when it
    # fits comfortably: ~48 MiB on 128-MiB parts (v5e/v6e), ~24 MiB on v7x.
    resident_threshold = min((3 * vmem_cap) // 8, 48 * 1024 * 1024)

    w_bytes = jnp.dtype(w.dtype).itemsize
    Sp = _round_up(S, 128)
    if H * Sp * w_bytes <= resident_threshold:
        ts = Sp
    else:
        ts = min(_round_up(tile_s, 128), Sp)
        Sp = _round_up(S, ts)
    # TODO(synk): for very large H (2*(tb*H + H*ts)*itemsize approaching
    # ~24-32 MiB on v7x) add a K grid axis with an f32 VMEM accumulator and
    # pl.when init/finalize instead of keeping the full contraction resident.

    if Sp != S:
        w = jnp.pad(w, ((0, 0), (0, Sp - S)))
        b = jnp.pad(b, ((0, 0), (0, Sp - S)))

    return dict(w=w, b=b, H=H, S=S, Sp=Sp, ts=ts, n_s=Sp // ts)


def _pick_batch_tile(B, granule, tile_b):
    """Pick a batch tile that fills the MXU while minimizing padding."""
    max_tile = max(granule, _round_up(tile_b, granule))
    Bg = _round_up(B, granule)
    if Bg <= max_tile:
        return Bg                                  # single tile, minimal padding
    best_tb, best_pad = None, None
    for cand in sorted({max_tile, 256, 128, 64}, reverse=True):
        cand = min(max(cand, granule), max_tile)
        pad = _round_up(B, cand) - B
        if best_pad is None or pad < best_pad:
            best_tb, best_pad = cand, pad
    return best_tb


def neural_to_symbol_forward(neural_repr, lin, *, tile_b=256,
                             prefer_xla_for_tiny=True,
                             tiny_flops_threshold=2_000_000):
    """symbol_logits = neural_repr @ W.T + b with W/b prepared by
    prepare_linear_params.  neural_repr: [B, H] -> [B, S] (activation dtype)."""
    B, H = neural_repr.shape
    assert H == lin["H"], "hidden dims must match"
    w, b2 = lin["w"], lin["b"]
    S, Sp, ts, n_s = lin["S"], lin["Sp"], lin["ts"], lin["n_s"]
    out_dtype = neural_repr.dtype

    # Tiny problems: fixed pallas_call + pad/slice overhead dominates and the
    # MXU is mostly idle; a fused XLA dot is at least as fast.
    if prefer_xla_for_tiny and 2 * B * H * S < tiny_flops_threshold:
        acc = jnp.dot(neural_repr.astype(w.dtype), w[:, :S],
                      preferred_element_type=jnp.float32)
        return (acc + b2[:, :S]).astype(out_dtype)

    granule = 16 if out_dtype == jnp.bfloat16 else 8      # sublane packing
    tb = _pick_batch_tile(B, granule, tile_b)
    n_b = _round_up(B, tb) // tb

    # v7x has 2 TensorCores sharded over 'parallel' axes: avoid a (1,1) grid.
    if n_s == 1 and n_b == 1 and tb >= 2 * granule:
        tb = max(granule, _round_up(pl.cdiv(B, 2), granule))

    # VMEM budget: 75% of physical capacity (leaves compiler/pipeline headroom,
    # esp. on v7x's 64 MiB).  Shrink the batch tile rather than silently clamp.
    buffered = _buffered_mode_supported()
    wb_bufs = 1 if buffered else 2
    x_bytes = jnp.dtype(neural_repr.dtype).itemsize
    w_bytes = jnp.dtype(w.dtype).itemsize
    o_bytes = jnp.dtype(out_dtype).itemsize

    def _vmem_est(tb_):
        return (2 * tb_ * H * x_bytes            # activation tiles, double-buffered
                + wb_bufs * H * ts * w_bytes     # weight tile(s)
                + wb_bufs * ts * 4               # bias tile(s), f32
                + 2 * tb_ * ts * o_bytes)        # output tiles, double-buffered

    vmem_budget = (3 * _vmem_capacity_bytes()) // 4
    while 2 * _vmem_est(tb) > vmem_budget and tb > granule:
        tb = max(granule, _round_up(tb // 2, granule))
    Bp = _round_up(B, tb)
    n_b = Bp // tb
    vmem_limit = int(min(max(2 * _vmem_est(tb), 32 * 1024 * 1024), vmem_budget))

    x = neural_repr
    if Bp != B:
        # TODO(synk): mask the ragged last batch tile in-kernel instead of padding.
        x = jnp.pad(x, ((0, Bp - B), (0, 0)))

    cost = pl.CostEstimate(                      # unpadded logical sizes
        flops=2 * B * H * S,
        transcendentals=0,
        bytes_accessed=(B * H * x_bytes + H * S * w_bytes + S * 4
                        + B * S * o_bytes),
    )

    def _spec(shape, index_map, inner_invariant=False):
        if inner_invariant and buffered:
            # Block index only changes at outer (S) axis boundaries: a single
            # buffer halves this operand's VMEM footprint.
            return pl.BlockSpec(shape, index_map, pipeline_mode=pl.Buffered(1))
        return pl.BlockSpec(shape, index_map)

    # Grid: S axis OUTER, batch axis INNER -> each (H, ts) weight tile is DMA'd
    # once per outer step and reused across the whole batch sweep.
    # TODO(synk): sweep pl.Buffered(3) on the activation spec when H is small.
    out = pl.pallas_call(
        _linear_kernel,
        out_shape=jax.ShapeDtypeStruct((Bp, Sp), out_dtype),
        grid_spec=pltpu.PrefetchScalarGridSpec(
            num_scalar_prefetch=0,
            grid=(n_s, n_b),
            in_specs=[
                _spec((tb, H), lambda s, b: (b, 0)),                       # activations
                _spec((H, ts), lambda s, b: (0, s), inner_invariant=True), # weight
                _spec((1, ts), lambda s, b: (0, s), inner_invariant=True), # bias
            ],
            out_specs=pl.BlockSpec((tb, ts), lambda s, b: (b, s)),
        ),
        compiler_params=pltpu.CompilerParams(
            dimension_semantics=("parallel", "parallel"),
            vmem_limit_bytes=vmem_limit,
        ),
        cost_estimate=cost,
    )(x, w, b2)

    if Bp != B or Sp != S:
        out = out[:B, :S]
    return out


def init_params(key, hidden_dim, num_symbols, num_classes):
    """Deterministic parameter init mirroring the PyTorch module's __init__."""
    k_w, k_b = jax.random.split(key)
    bound = 1.0 / jnp.sqrt(hidden_dim)          # nn.Linear default uniform init
    weight = jax.random.uniform(
        k_w, (num_symbols, hidden_dim), jnp.float32, minval=-bound, maxval=bound)
    bias = jax.random.uniform(
        k_b, (num_symbols,), jnp.float32, minval=-bound, maxval=bound)
    # Extra module parameters (unused by forward(), kept for fidelity):
    symbol_to_class = jnp.zeros((num_symbols, num_classes), jnp.float32)
    threshold_base = jnp.ones((1,), jnp.float32) * 0.5
    threshold_scale = jnp.ones((num_symbols,), jnp.float32) * 0.1
    return dict(weight=weight, bias=bias, symbol_to_class=symbol_to_class,
                threshold_base=threshold_base, threshold_scale=threshold_scale)


if __name__ == "__main__":
    hidden_dim, num_symbols, num_classes = 32, 128, 10
    batch = 8

    key = jax.random.PRNGKey(0)
    k_params, k_x, k_x2 = jax.random.split(key, 3)
    params = init_params(k_params, hidden_dim, num_symbols, num_classes)

    # One-time weight preprocessing (transpose / pad); f32 matmul operands here.
    lin_f32 = prepare_linear_params(params["weight"], params["bias"])

    # Small demo matching the module spec.  prefer_xla_for_tiny=False so the
    # Pallas kernel itself is exercised at this tiny shape.
    neural_repr = jax.random.normal(k_x, (batch, hidden_dim), jnp.float32)
    symbol_logits = neural_to_symbol_forward(neural_repr, lin_f32,
                                             prefer_xla_for_tiny=False)
    symbol_logits = jax.block_until_ready(symbol_logits)
    ref = neural_repr @ params["weight"].T + params["bias"]
    assert symbol_logits.shape == (batch, num_symbols)
    assert jnp.allclose(symbol_logits, ref, atol=1e-5, rtol=1e-5)

    # Larger, non-tile-multiple batch: exercises the minimized-padding batch
    # tiling and the multi-block parallel grid.
    big_batch = 300
    x_big = jax.random.normal(k_x2, (big_batch, hidden_dim), jnp.float32)
    logits_big = neural_to_symbol_forward(x_big, lin_f32,
                                          prefer_xla_for_tiny=False)
    logits_big = jax.block_until_ready(logits_big)
    ref_big = x_big @ params["weight"].T + params["bias"]
    assert logits_big.shape == (big_batch, num_symbols)
    assert jnp.allclose(logits_big, ref_big, atol=1e-4, rtol=1e-4)

    # bf16 MXU-operand path (weights pre-cast once at init, activations cast
    # in-kernel, f32 accumulation) with a looser tolerance.
    lin_bf16 = prepare_linear_params(params["weight"], params["bias"],
                                     matmul_dtype=jnp.bfloat16)
    logits_bf16 = neural_to_symbol_forward(x_big, lin_bf16,
                                           prefer_xla_for_tiny=False)
    logits_bf16 = jax.block_until_ready(logits_bf16)
    assert logits_bf16.shape == (big_batch, num_symbols)
    assert jnp.allclose(logits_bf16, ref_big, atol=5e-2, rtol=5e-2)

    print("KERNEL_OK")
</pallas_src>

<mosaic_0001>
module attributes {stable_mosaic.version = 11 : i64} {
  func.func @_probe(%arg0: i32, %arg1: memref<8x128xf32, #tpu.memory_space<vmem>>, %arg2: memref<8x128xf32, #tpu.memory_space<vmem>>) attributes {dimension_semantics = [#tpu.dimension_semantics<arbitrary>], iteration_bounds = array<i64: 2>, scalar_prefetch = 0 : i64, scratch_operands = 0 : i64, tpu.core_type = #tpu.core_type<tc>, window_params = [{pipeline_mode = #tpu.pipeline_mode<synchronous>, transform_indices = @transform_0, window_bounds = array<i64: 8, 128>}, {transform_indices = @transform_1, window_bounds = array<i64: 8, 128>}]} {
    %c0 = arith.constant 0 : index
    %c0_0 = arith.constant 0 : index
    %0 = vector.load %arg1[%c0, %c0_0] : memref<8x128xf32, #tpu.memory_space<vmem>>, vector<8x128xf32>
    %c0_1 = arith.constant 0 : index
    %c0_2 = arith.constant 0 : index
    %1 = vector.load %arg2[%c0_1, %c0_2] : memref<8x128xf32, #tpu.memory_space<vmem>>, vector<8x128xf32>
    tpu.vector_store %arg2[%c0_1, %c0_2], %0 {strides = array<i32>} : memref<8x128xf32, #tpu.memory_space<vmem>>, vector<8x128xf32>,
    return
  }
  func.func @transform_0(%arg0: i32) -> (i32, i32) {
    %c0_i32 = arith.constant 0 : i32
    %c0_i32_0 = arith.constant 0 : i32
    %c0_i32_1 = arith.constant 0 : i32
    return %c0_i32, %c0_i32_0 : i32, i32
  }
  func.func @transform_1(%arg0: i32) -> (i32, i32) {
    %c0_i32 = arith.constant 0 : i32
    %c0_i32_0 = arith.constant 0 : i32
    return %arg0, %c0_i32 : i32, i32
  }
}

module attributes {stable_mosaic.version = 11 : i64} {
  func.func @_linear_kernel(%arg0: i32, %arg1: i32, %arg2: memref<8x32xf32, #tpu.memory_space<vmem>>, %arg3: memref<32x128xf32, #tpu.memory_space<vmem>>, %arg4: memref<1x128xf32, #tpu.memory_space<vmem>>, %arg5: memref<8x128xf32, #tpu.memory_space<vmem>>) attributes {dimension_semantics = [#tpu.dimension_semantics<parallel>, #tpu.dimension_semantics<parallel>], iteration_bounds = array<i64: 1, 1>, scalar_prefetch = 0 : i64, scratch_operands = 0 : i64, tpu.core_type = #tpu.core_type<tc>, window_params = [{transform_indices = @transform_0, window_bounds = array<i64: 8, 32>}, {transform_indices = @transform_1, window_bounds = array<i64: 32, 128>}, {transform_indices = @transform_2, window_bounds = array<i64: 1, 128>}, {transform_indices = @transform_3, window_bounds = array<i64: 8, 128>}]} {
    %c0 = arith.constant 0 : index
    %c0_0 = arith.constant 0 : index
    %0 = vector.load %arg2[%c0, %c0_0] : memref<8x32xf32, #tpu.memory_space<vmem>>, vector<8x32xf32>
    %c0_1 = arith.constant 0 : index
    %c0_2 = arith.constant 0 : index
    %1 = vector.load %arg3[%c0_1, %c0_2] : memref<32x128xf32, #tpu.memory_space<vmem>>, vector<32x128xf32>
    %cst = arith.constant dense<0.000000e+00> : vector<8x128xf32>
    %2 = tpu.matmul %0, %1, %cst {dimension_numbers = #tpu.dot_dimension_numbers<[1], [0], [0], [1], [0, 0, 1, 1], [], []>} : vector<8x32xf32>, vector<32x128xf32>, vector<8x128xf32> -> vector<8x128xf32>
    %c0_3 = arith.constant 0 : index
    %c0_4 = arith.constant 0 : index
    %3 = vector.load %arg4[%c0_3, %c0_4] : memref<1x128xf32, #tpu.memory_space<vmem>>, vector<1x128xf32>
    %4 = vector.broadcast %3 : vector<1x128xf32> to vector<8x128xf32>
    %5 = arith.addf %2, %4 : vector<8x128xf32>
    %c0_5 = arith.constant 0 : index
    %c0_6 = arith.constant 0 : index
    %6 = vector.load %arg5[%c0_5, %c0_6] : memref<8x128xf32, #tpu.memory_space<vmem>>, vector<8x128xf32>
    tpu.vector_store %arg5[%c0_5, %c0_6], %5 {strides = array<i32>} : memref<8x128xf32, #tpu.memory_space<vmem>>, vector<8x128xf32>,
    return
  }
  func.func @transform_0(%arg0: i32, %arg1: i32) -> (i32, i32) {
    %c0_i32 = arith.constant 0 : i32
    %c0_i32_0 = arith.constant 0 : i32
    return %arg1, %c0_i32 : i32, i32
  }
  func.func @transform_1(%arg0: i32, %arg1: i32) -> (i32, i32) {
    %c0_i32 = arith.constant 0 : i32
    %c0_i32_0 = arith.constant 0 : i32
    return %c0_i32, %arg0 : i32, i32
  }
  func.func @transform_2(%arg0: i32, %arg1: i32) -> (i32, i32) {
    %c0_i32 = arith.constant 0 : i32
    %c0_i32_0 = arith.constant 0 : i32
    return %c0_i32, %arg0 : i32, i32
  }
  func.func @transform_3(%arg0: i32, %arg1: i32) -> (i32, i32) {
    %c0_i32 = arith.constant 0 : i32
    return %arg1, %arg0 : i32, i32
  }
}

</mosaic_0001>

<bundles_post_ra>
// kernel: tpu_custom_call.1
= control target key start
LH: loop header
LB: loop body
LE: loop exit
PB: predicated region body
PF: predicated region fallthrough
CT: control target
= control target key end

     0   :  { %6 = vsyncpa [#allocation3], 0  ;;  %s481_s0 = inlined_call_operand.hbm [shape: f32[8,128], index: 0, kind: input, shape index: {}]   ;;  %s482_s1 = inlined_call_operand.hbm [shape: f32[16,128], index: 1, kind: output, shape index: {}]  }
   0x1   :  { %7 = vsyncpa [#allocation4], 0 }
   0x2   :  { %9 = vsyncpa [#allocation4 + $0x1], 0  ;;  %s351_s6 = smov 0   ;;  %s353_s7 = smov 0  }
   0x3   :  { %s355_s8 = smov 0   ;;  %s357_s9 = smov 0  }
   0x4 LB: > { %s372_s10 = sadd.s32 4294967295, %s337_s9   ;;  %s183_s11 = sadd.s32 4294967294, %s337_s9   ;;  %s337_s9 = sphi %s357_s9, %s498_s9   ;;  %s333_s8 = sphi %s355_s8, %s497_s8   ;;  %s329_s7 = sphi %s353_s7, %s496_s7   ;;  %s325_s6 = sphi %s351_s6, %s495_s6  }
   0x5   : > { %s376_s12 = sadd.s32 1, %s337_s9   ;;  %s43_s13 = sadd.s32 1, %s333_s8 }
   0x6   : > { %s40_s14 = ssub.s32 %s337_s9, %s376_s12  ;;  %p53_p0 = scmp.ne.s32.totalorder %s333_s8, %s329_s7 }
   0x7   : > { %p41_p1 = scmp.eq.s32.totalorder %s40_s14, 0  ;;  %p54_p2 = scmp.eq.s32.totalorder %s372_s10, 1 }
   0x8   : > { %p59_p3 = scmp.ne.s32.totalorder %s329_s7, %s325_s6  ;;  %p60_p4 = scmp.eq.s32.totalorder %s183_s11, 1 }
   0x9   : > { %s387_s15 = scalar_select %p41_p1, %s333_s8, %s43_s13  }
   0xa   : > { %p389_p5 = por %p54_p2, %p53_p0  ;;  %p393_p6 = por %p60_p4, %p59_p3 }
   0xb   : > { %p184_p7 = scmp.ge.s32.totalorder %s337_s9, 1  ;;  %p67_p8 = scmp.lt.s32.totalorder %s337_s9, 3 }
   0xc   : > { %s486_s16 = scalar_select %p389_p5, 1, 0 }
   0xd   : > { %s487_s17 = scalar_select %p393_p6, 1, 0 }
   0xe   : > { %p483_p9 = scmp.eq.s32.totalorder %s372_s10, 0  ;;  %p400_p10 = pnand %p184_p7, %p67_p8 }
   0xf   : > { %s339_s19 = smov [#allocation2]   ;;  %s243_s24 = scalar_lea.hbm %s481_s0, 128 }
  0x10   : > { %s488_s18 = scalar_select %p400_p10, 1, 0 }
  0x11   : > { %s80_s20 = sshll.u32 %s339_s19, 4  ;;  %p199_p11 = pneg %p400_p10  ;;  %s81_s20 = int_to_ptr.vmem [resolvable:$true] %s80_s20 }
  0x12   : > { %p244_p13 = scmp.ne.s32.totalorder %s481_s0, %s243_s24  ;;  %p250_p3 = scmp.lt.u32.totalorder %s243_s24, %s481_s0 }
  0x13   : > { %p408_p12 = pnand %p483_p9, %p199_p11 }
  0x15   : > { %p245_p0 = pneg %p408_p12 }
  0x17   : > { %p246_p1 = pnand %p245_p0, %p244_p13 }
  0x19   : > { %p247_p2 = pneg %p246_p1 }
  0x1b   : > { %p252_p4 = pnand %p250_p3, %p247_p2 }
  0x1d   : > { %255 = shalt.err (!%p252_p4)
}
  0x1e   : > { %s256_s29 = scalar_lea.vmem %s81_s20, 128  ;;  %p264_p9 = scmp.lt.s32.totalorder %s81_s20, %s81_s20 }
  0x1f   : > { %p257_p7 = scmp.ne.s32.totalorder %s81_s20, %s256_s29  ;;  %p265_p6 = scmp.lt.s32.totalorder %s256_s29, %s256_s29 }
  0x21   : > { %p259_p8 = pnand %p257_p7, %p245_p0  ;;  %p266_p5 = por %p265_p6, %p264_p9 }
  0x23   : > { %p260_p11 = pneg %p259_p8 }
  0x25   : > { %p267_p10 = pnand %p266_p5, %p260_p11 }
  0x27   : > { %270 = shalt.err (!%p267_p10)
}
  0x28   : > { %202 = dma.hbm_to_vmem [thread:$0]  (!%p408_p12), %s481_s0, 128, %s81_s20, [#allocation3]  }
  0x29   : > { %p490_p13 = scmp.ne.s32.totalorder %s488_s18, 0 }
  0x2a   : > { %p491_p1 = scmp.eq.s32.totalorder (!%p490_p13), %s372_s10, 0 }
  0x2b   : > { %93 = sbr.rel (%p490_p13) target bundleno = 77 (0x4d), region = 24 }
  0x32   : > { %316 = dma.done.wait (%p491_p1), [#allocation3], 128   ;;  %p492_p0 = pmov %p491_p1 }
  0x33   : > { %s105_s3 = sand.u32 1, %s329_s7   ;;  %s190_s13 = sshll.u32 %s372_s10, 7  ;;  %v108_v0 = vld [vmem:[#allocation2] sm:$0xff] }
  0x34   : > { %318 = vsyncadd (%p492_p0), [#allocation3], 4294967168  ;;  %s188_s4 = sshll.u32 %s105_s3, 3  ;;  %s441_s18 = scalar_lea.hbm %s482_s1, %s190_s13 }
  0x35   : > { %s107_s5 = scalar_lea.vmem [#allocation5], %s188_s4  ;;  %s111_s20 = scalar_lea.sflag [#allocation4], %s105_s3 }
  0x36   : > { %s124_s11 = sshll.u32 %s107_s5, 4  ;;  %109 = vst [vmem:[%s107_s5] sm:$0xff] %v108_v0  ;;  %p493_p6 = scmp.ne.s32.totalorder %s486_s16, 0  ;;  %s436_s11 = int_to_ptr.vmem [resolvable:$true] %s124_s11 }
  0x37   : > { %s271_s21 = scalar_lea.vmem %s436_s11, 128  ;;  %s340_s22 = smov [#allocation5]  }
  0x38   : > { %p272_p5 = scmp.ne.s32.totalorder %s436_s11, %s271_s21  ;;  %s275_s10 = sshll.u32 %s340_s22, 4  ;;  %s276_s10 = int_to_ptr.vmem [resolvable:$false] %s275_s10 }
  0x39   : > { %s277_s23 = scalar_lea.vmem %s276_s10, 256  ;;  %p278_p12 = scmp.lt.s32.totalorder %s436_s11, %s276_s10 }
  0x3a   : > { %p273_p9 = pnand %p272_p5, %p493_p6  ;;  %p279_p2 = scmp.lt.s32.totalorder %s277_s23, %s271_s21 }
  0x3c   : > { %p274_p10 = pneg %p273_p9  ;;  %p280_p3 = por %p279_p2, %p278_p12 }
  0x3e   : > { %p281_p4 = pnand %p280_p3, %p274_p10 }
  0x40   : > { %284 = shalt.err (!%p281_p4)
}
  0x41   : > { %s285_s24 = scalar_lea.hbm %s441_s18, 128  ;;  %s289_s27 = scalar_lea.hbm %s482_s1, 256 }
  0x42   : > { %p286_p7 = scmp.ne.s32.totalorder %s441_s18, %s285_s24  ;;  %p290_p13 = scmp.lt.u32.totalorder %s441_s18, %s482_s1 }
  0x43   : > { %p291_p1 = scmp.lt.u32.totalorder %s289_s27, %s285_s24  ;;  %p293_p5 = scmp.lt.u32.totalorder %s285_s24, %s441_s18 }
  0x44   : > { %p287_p8 = pnand %p286_p7, %p493_p6 }
  0x45   : > { %p292_p0 = por %p291_p1, %p290_p13 }
  0x46   : > { %p288_p11 = pneg %p287_p8 }
  0x47   : > { %p294_p9 = por %p293_p5, %p292_p0 }
  0x49   : > { %p295_p10 = pnand %p294_p9, %p288_p11 }
  0x4b   : > { %298 = shalt.err (!%p295_p10)
}
  0x4c   : > { %197 = dma.vmem_to_hbm [thread:$0]  (%p493_p6), %s436_s11, 128, %s441_s18, %s111_s20  }
  0x4d PF: > { %p209_p12 = scmp.ge.s32.totalorder %s337_s9, 2  ;;  %s136_s30 = sand.u32 1, %s325_s6  }
  0x4e   : > { %p494_p2 = scmp.ne.s32.totalorder %s487_s17, 0  ;;  %s137_s2 = scalar_lea.sflag [#allocation4], %s136_s30 }
  0x50   : > { %p204_p3 = pnand %p209_p12, %p494_p2 }
  0x52   : > { %320 = dma.done.wait (!%p204_p3), %s137_s2, 128  }
  0x53   : > { %322 = vsyncadd (!%p204_p3), %s137_s2, 4294967168  ;;  %p12_p4 = scmp.ge.s32.totalorder %s376_s12, 4   ;;  %s495_s6 = smov %s329_s7 }
  0x54   : > { %s496_s7 = smov %s333_s8  ;;  %s497_s8 = smov %s387_s15 }
  0x55   : > { %s498_s9 = smov %s376_s12  ;;  %14 = sbr.rel (!%p12_p4) target bundleno = 4 (0x4), region = 61 }
  0x5c   :  { %142 = vsyncpa [#allocation3], 1 }
  0x5d   :  { %144 = vsyncpa [#allocation3 + $0x1], 1 }
  0x5e   :  { %145 = vsyncpa [#allocation4], 1 }
  0x5f   :  { %147 = vsyncpa [#allocation4 + $0x1], 1 }

// kernel: tpu_custom_call.1
= control target key start
LH: loop header
LB: loop body
LE: loop exit
PB: predicated region body
PF: predicated region fallthrough
CT: control target
= control target key end

     0   :  { %8 = vsyncpa [#allocation3], 0  ;;  %s322_s0 = inlined_call_operand.hbm [shape: f32[8,32], index: 0, kind: input, shape index: {}]   ;;  %s323_s1 = inlined_call_operand.hbm [shape: f32[32,128], index: 1, kind: input, shape index: {}]   ;;  %s324_s2 = inlined_call_operand.vmem [shape: f32[1,128], index: 2, kind: input, shape index: {}]   ;;  %s325_s3 = inlined_call_operand.hbm [shape: f32[8,128], index: 3, kind: output, shape index: {}]  }
   0x1   :  { %9 = vsyncpa [#allocation6], 0 }
   0x2   :  { %10 = vsyncpa [#allocation4], 0  ;;  %s248_s12 = smov [#allocation2]   ;;  %s249_s14 = smov [#allocation5]  }
   0x3   :  { %s17_s13 = sshll.u32 %s248_s12, 4  ;;  %s26_s15 = sshll.u32 %s249_s14, 4  ;;  %s18_s13 = int_to_ptr.vmem [resolvable:$true] %s17_s13  ;;  %s276_s15 = int_to_ptr.vmem [resolvable:$true] %s26_s15 }
   0x4   :  { %s176_s18 = scalar_lea.hbm %s322_s0, 128 }
   0x5   :  { %p177_p0 = scmp.ne.s32.totalorder %s322_s0, %s176_s18  ;;  %p180_p1 = scmp.lt.u32.totalorder %s176_s18, %s322_s0 }
   0x7   :  { %p182_p2 = pnand %p180_p1, %p177_p0 }
   0x9   :  { %185 = shalt.err (!%p182_p2)
}
   0xa   :  { %s186_s23 = scalar_lea.vmem %s18_s13, 128  ;;  %p191_p4 = scmp.lt.s32.totalorder %s18_s13, %s18_s13 }
   0xb   :  { %p187_p3 = scmp.ne.s32.totalorder %s18_s13, %s186_s23  ;;  %p192_p5 = scmp.lt.s32.totalorder %s186_s23, %s186_s23 }
   0xd   :  { %p193_p6 = por %p192_p5, %p191_p4 }
   0xf   :  { %p194_p7 = pnand %p193_p6, %p187_p3 }
  0x11   :  { %197 = shalt.err (!%p194_p7)
}
  0x12   :  { %20 = dma.hbm_to_vmem [thread:$0]  %s322_s0, 128, %s18_s13, [#allocation3]  }
  0x13   :  { %s198_s28 = scalar_lea.hbm %s323_s1, 512 }
  0x14   :  { %p199_p8 = scmp.ne.s32.totalorder %s323_s1, %s198_s28  ;;  %p202_p9 = scmp.lt.u32.totalorder %s198_s28, %s323_s1 }
  0x16   :  { %p204_p10 = pnand %p202_p9, %p199_p8 }
  0x18   :  { %207 = shalt.err (!%p204_p10)
}
  0x19   :  { %s208_s6 = scalar_lea.vmem %s276_s15, 512  ;;  %p213_p12 = scmp.lt.s32.totalorder %s276_s15, %s276_s15 }
  0x1a   :  { %p209_p11 = scmp.ne.s32.totalorder %s276_s15, %s208_s6  ;;  %p214_p13 = scmp.lt.s32.totalorder %s208_s6, %s208_s6 }
  0x1c   :  { %p215_p0 = por %p214_p13, %p213_p12 }
  0x1e   :  { %p216_p1 = pnand %p215_p0, %p209_p11 }
  0x20   :  { %219 = shalt.err (!%p216_p1)
}
  0x21   :  { %s250_s0 = smov 128   ;;  %s251_s7 = smov 8  }
  0x22   :  { %32 = dma.hbm_to_vmem [thread:$0]  %s323_s1, 512, %s276_s15, [#allocation6], %s250_s0, %s250_s0, %s251_s7  }
  0x23   :  { %242 = dma.done.wait [#allocation3], 128  }
  0x24   :  { %243 = vsyncadd [#allocation3], 4294967168 }
  0x25   :  { %244 = dma.done.wait [#allocation6], 512  }
  0x26   :  { %245 = vsyncadd [#allocation6], 4294966784  ;;  %v252_v0 = vmov 0.0|0.0   ;;  %vm253_vm0 = vmmov 0   ;;  %v254_v1 = vmov 0.0   ;;  %v42_v2 = vld [vmem:[#allocation5] sm:$0xff] }
  0x27   :  { %162 = vmatprep.subr.bf16.mxu0 %v252_v0  ;;  %159 = vmatprep.mubr.msk.f32.mxu0 %vm253_vm0, %v254_v1  ;;  %v43_v3 = vld [vmem:[#allocation5 + $0x8] sm:$0xff]  ;;  %v44_v4 = vld [vmem:[#allocation5 + $0x10] sm:$0xff]  ;;  %v45_v6 = vld [vmem:[#allocation5 + $0x18] sm:$0xff]  ;;  %vm53_vm1 = vcmask 261120   ;;  %s255_s11 = smov [#allocation7]  }
  0x28   :  { %v163_v5 = vpack.c.bf16 %v43_v3, %v42_v2  ;;  %v166_v7 = vpack.c.bf16 %v45_v6, %v44_v4  ;;  %v41_v8 = vld [vmem:[#allocation2] sm:$0xff]  ;;  %s134_s12 = sshll.u32 %s255_s11, 4  ;;  %s135_s12 = int_to_ptr.vmem [resolvable:$true] %s134_s12 }
  0x29   :  { %v144_v9 = vld [vmem:[%s324_s2] ss:$0 sm:$0xff]  ;;  %s220_s13 = scalar_lea.vmem %s135_s12, 128  ;;  %p225_p3 = scmp.lt.s32.totalorder %s135_s12, %s135_s12 }
  0x2a   :  { %164 = vmatpush3.bf16.msra.mxu0 %v163_v5  ;;  %p221_p2 = scmp.ne.s32.totalorder %s135_s12, %s220_s13  ;;  %p226_p4 = scmp.lt.s32.totalorder %s220_s13, %s220_s13 }
  0x2b   :  { %165 = vmatprep.subr.bf16.mxu0 %v252_v0 }
  0x2c   :  { %p227_p5 = por %p226_p4, %p225_p3 }
  0x2e   :  { %167 = vmatpush3.bf16.msra.mxu0 %v166_v7  ;;  %p228_p6 = pnand %p227_p5, %p221_p2 }
  0x31   :  { %160 = vmatmul.mubr.msk.f32.vlgmr.msra.gmra.mrb[0].mxu0 %vm53_vm1, %v41_v8 }
 0x104   :  { %v123_v10 = vpop.f32.mrb[0].mxu0 }
 0x105   :  { %v124_v11 = vadd.f32 %v144_v9, %v123_v10  ;;  %v161_v12 = vpop.f32.mrb[1].mxu0 }
 0x107   :  { %127 = vst [vmem:[#allocation7] sm:$0xff] %v124_v11 }
 0x108   :  { %231 = shalt.err (!%p228_p6)
}
 0x109   :  { %s232_s16 = scalar_lea.hbm %s325_s3, 128 }
 0x10a   :  { %p233_p7 = scmp.ne.s32.totalorder %s325_s3, %s232_s16  ;;  %p236_p8 = scmp.lt.u32.totalorder %s232_s16, %s325_s3 }
 0x10c   :  { %p238_p9 = pnand %p236_p8, %p233_p7 }
 0x10e   :  { %241 = shalt.err (!%p238_p9)
}
 0x10f   :  { %137 = dma.vmem_to_hbm [thread:$0]  %s135_s12, 128, %s325_s3, [#allocation4]  }
 0x110   :  { %246 = dma.done.wait [#allocation4], 128  }
 0x111   :  { %247 = vsyncadd [#allocation4], 4294967168 }
 0x112   :  { %141 = vsyncpa [#allocation3], 1 }
 0x113   :  { %142 = vsyncpa [#allocation6], 1 }
 0x114   :  { %143 = vsyncpa [#allocation4], 1 }

</bundles_post_ra>
